<compile_context>
chip_gen: v5e
topology: v5e:2x2
jax: 0.10.0
libtpu: 0.0.40
codegen_flags: <defaults>
</compile_context>

<pallas_src>
import functools

import jax
import jax.numpy as jnp
from jax.experimental import pallas as pl
from jax.experimental.pallas import tpu as pltpu


def _cdiv(a, b):
    return (a + b - 1) // b


def _fewshot_intent_kernel(sup_reps_ref, sup_mask_ref, sup_lab_ref, test_rep_ref,
                           tag_ref, out_ref, num_acc, cnt_acc, *, num_tags):
    # sup_reps_ref : (TB, SB, L, D)  support token reps, native HBM dtype (no f32 upcast)
    # sup_mask_ref : (TB, SB, 1, L)  support token output mask (f32)
    # sup_lab_ref  : (TB, SB, 1, 1)  int32 support label per example (-1 = padded/empty row)
    # test_rep_ref : (TB, 1, D)      first test token only
    # tag_ref      : (TB, 1) int32   CE targets: tags = relu(test_target - 1)
    # out_ref      : (TB, WPAD)      packed: [:, :T] emission, [:, T] per-example loss
    # num_acc/cnt_acc : (TB, WPAD) f32 scratch accumulated over the support grid axis
    f32 = jnp.float32
    si = pl.program_id(1)
    ns = pl.num_programs(1)

    @pl.when(si == 0)
    def _init():
        num_acc[...] = jnp.zeros_like(num_acc)
        cnt_acc[...] = jnp.zeros_like(cnt_acc)

    tb, sb, L, D = sup_reps_ref.shape
    wpad = out_ref.shape[-1]

    # Masked-mean weights over support tokens, 1/token_count folded into the weights.
    mask = sup_mask_ref[...]                                   # (TB, SB, 1, L) f32
    tok_cnt = jnp.sum(mask, axis=-1, keepdims=True)            # (TB, SB, 1, 1)
    w = mask / jnp.maximum(tok_cnt, 1.0)                       # (TB, SB, 1, L)

    # Support sentence reps: one batched MXU contraction that consumes the big tile in
    # its native dtype with f32 accumulation.  Reshapes only collapse/split leading
    # dims (last two dims untouched), so no relayout of the big tensor.
    rep_dtype = sup_reps_ref.dtype
    sup_g = sup_reps_ref[...].reshape(tb * sb, L, D)           # native dtype
    w_g = w.astype(rep_dtype).reshape(tb * sb, 1, L)
    sent = jnp.einsum('gol,gld->god', w_g, sup_g,
                      preferred_element_type=f32)              # (TB*SB, 1, D) f32
    sent = sent.reshape(tb, sb, 1, D)

    # Test sentence rep = first test token (module overrides test_output_mask = ones(B,1)).
    test_sent = test_rep_ref[...].astype(f32)                  # (TB, 1, D)
    # sim[b, s] = <test_sent_b, support_sent_{b,s}>
    sim = jnp.sum(sent * test_sent[:, None, :, :], axis=-1,
                  keepdims=True)                               # (TB, SB, 1, 1) f32

    # One-hot support targets rebuilt in-kernel at lane width from integer labels
    # (nothing lane-padded streamed from HBM).  Label -1 never matches -> padded and
    # empty support rows contribute neither to the class sums nor the class counts.
    lab = sup_lab_ref[...]                                     # (TB, SB, 1, 1) int32
    col4 = jax.lax.broadcasted_iota(jnp.int32, (tb, sb, 1, wpad), 3)
    onehot = jnp.where(col4 == lab, 1.0, 0.0)                  # (TB, SB, 1, WPAD) f32

    # Accumulate un-normalized prototype similarities and per-class counts over the
    # support grid axis; the 1/class_count normalization is applied at the last step.
    num_acc[...] += jnp.sum(sim * onehot, axis=1)[:, 0, :]     # (TB, WPAD)
    cnt_acc[...] += jnp.sum(onehot, axis=1)[:, 0, :]           # (TB, WPAD)

    @pl.when(si == ns - 1)
    def _finalize():
        # emission[b, t] = <test_sent_b, prototype_{b,t}>  (tags with no support keep 0)
        emis = num_acc[...] / jnp.maximum(cnt_acc[...], 1.0)   # (TB, WPAD)
        col = jax.lax.broadcasted_iota(jnp.int32, (tb, wpad), 1)
        valid = col < num_tags
        # decoder.forward: cross-entropy(emission, tags); padded tag columns are masked
        # out of the softmax, the real emission values stay in the output slab.
        logits = jnp.where(valid, emis, -1e30)
        m = jnp.max(logits, axis=-1, keepdims=True)
        lse = m + jnp.log(jnp.sum(jnp.exp(logits - m), axis=-1, keepdims=True))
        tag = tag_ref[...]                                     # (TB, 1) int32
        picked = jnp.sum(jnp.where(col == tag, emis, 0.0), axis=-1, keepdims=True)
        loss = lse - picked                                    # (TB, 1)
        # Lane-dense packed store: emission in [:, :T], per-example loss in [:, T].
        out_ref[...] = jnp.where(col == num_tags, loss,
                                 jnp.where(valid, emis, 0.0))


def _per_example_vmem_bytes(s_blk, L, D, wpad, itemsize):
    # Tile-padded, double-buffer-aware per-example footprint of one grid step.
    lane = lambda n: max(n, 128)
    blk_in = (s_blk * L * D * itemsize            # support token reps (native dtype)
              + s_blk * 8 * lane(L) * 4           # mask (.., 1, L): unit sublane padded to 8
              + s_blk * 8 * 128 * 4               # int labels (.., 1, 1)
              + 8 * lane(D) * itemsize            # first test token
              + 128 * 4)                          # CE target
    blk_out = wpad * 4
    work = (2 * s_blk * 8 * lane(D) * 4           # sent / sim product (unit-sublane f32)
            + 2 * s_blk * 8 * wpad * 4            # in-kernel one-hot (+ product)
            + s_blk * 8 * lane(L) * 4             # masked-mean weights (+ cast copy)
            + 8 * wpad * 4)                       # emission / CE rows
    scratch = 2 * wpad * 4                        # num/cnt accumulators
    return 2 * (blk_in + blk_out) + work + scratch


def _select_tiles(B, S, L, D, wpad, itemsize, batch_tile, support_tile):
    # Generation-aware VMEM budget (v5e/v6e: 128 MiB physical, v7x: 64 MiB per core).
    try:
        vmem_cap = int(getattr(pltpu.get_tpu_info(), "vmem_capacity_bytes", 0) or 0)
    except Exception:
        vmem_cap = 0
    if vmem_cap <= 0:
        vmem_cap = 64 * 2**20                     # conservative fallback (v7x per-core)
    budget = int(0.72 * vmem_cap)                 # ~92 MiB on 128 MiB, ~46 MiB on 64 MiB

    per_ex = lambda sb: _per_example_vmem_bytes(sb, L, D, wpad, itemsize)

    # Support-axis block: shrink until min(B, 8) examples fit the budget per step.
    if support_tile is not None:
        s_blk = max(1, min(support_tile, S))
    else:
        s_blk = S
        while s_blk > 1 and min(B, 8) * per_ex(s_blk) > budget:
            s_blk = max(8, _cdiv(s_blk // 2, 8) * 8) if s_blk > 8 else max(1, s_blk // 2)
        # TODO(synk): shapes where a single support example (L*D) exceeds the budget
        # would additionally need L/D tiling of the contraction.

    # Batch block from the remaining budget (no hard 128 cap; up to 512).
    if batch_tile is not None:
        tb = max(1, min(batch_tile, B))
    else:
        tb = max(1, min(B, 512, budget // max(per_ex(s_blk), 1)))
        if B > 8:
            tb = min(tb, _cdiv(B, 2))             # >=2 batch steps: megacore + halved per-TC VMEM
        # If the batch axis degenerates to one step, split S for DMA/compute pipelining.
        if support_tile is None and tb >= B and s_blk == S and S >= 16:
            s_blk = max(8, _cdiv(_cdiv(S, 2), 8) * 8)
    if tb < B:
        tb = max(8, _cdiv(tb, 8) * 8)             # sublane-aligned batch blocks; batch padded
        if tb >= B:
            tb = B

    step_bytes = tb * per_ex(s_blk)
    vmem_limit = int(min(int(0.9 * vmem_cap), max(32 * 2**20, int(1.35 * step_bytes))))
    return tb, s_blk, vmem_limit


def few_shot_text_classifier_forward(test_reps, test_output_mask, support_reps,
                                     support_output_mask, test_target, support_target,
                                     *, batch_tile=None, support_tile=None):
    """Mirror of FewShotTextClassifier.cal_emission + forward.

    test_reps          : (B, Lt, D)
    test_output_mask   : (B, Lt)  -- module overrides it with ones(B,1) -> first token rep
    support_reps       : (B, S, L, D)   (pass bf16/fp8 reps for a ~2-4x HBM-bandwidth win;
                                         the kernel consumes them in their native dtype)
    support_output_mask: (B, S, L)
    test_target        : (B, M) int32, 1-indexed (0 = pad); multi-label_num M treated as 1
    support_target     : (B, S, M, T) one-hot
    returns: (scalar mean loss, emission logits (B, T))
    """
    B, Lt, D = test_reps.shape
    _, S, L, _ = support_reps.shape
    T = support_target.shape[-1]
    WPAD = _cdiv(T + 1, 128) * 128     # lane-dense slab width (emission + loss column)

    # The module replaces test_output_mask with ones(B, 1): the caller-provided mask is
    # intentionally ignored and the test sentence rep is the first test token.
    del test_output_mask

    itemsize = jnp.dtype(support_reps.dtype).itemsize
    tb, s_blk, vmem_limit = _select_tiles(B, S, L, D, WPAD, itemsize,
                                          batch_tile, support_tile)
    n_b, n_s = _cdiv(B, tb), _cdiv(S, s_blk)
    BP, SP = n_b * tb, n_s * s_blk

    # Glue (plain JAX, all tiny except an optional pad of support_reps):
    #  * multi-label dim M treated as 1 (intent classification), as in the module's use
    #  * integer support labels (-1 for rows with an all-zero one-hot) instead of a
    #    lane-padded one-hot stream
    #  * only the first test token is shipped to the kernel
    #  * integer CE targets tags = relu(test_target - 1); pad label 0 maps to class 0
    #    and is included in the mean loss (matches the reference module behaviour).
    sup_tgt = support_target[:, :, 0, :].astype(jnp.float32)                      # (B,S,T)
    lab = jnp.argmax(sup_tgt, axis=-1).astype(jnp.int32)                          # (B,S)
    has_lab = jnp.sum(sup_tgt, axis=-1) > 0.0
    sup_lab = jnp.where(has_lab, lab, -1).astype(jnp.int32)[:, :, None, None]     # (B,S,1,1)
    sup_mask = support_output_mask.astype(jnp.float32)[:, :, None, :]             # (B,S,1,L)
    test_first = test_reps[:, :1, :]                                              # (B,1,D)
    tags = jnp.maximum(test_target[:, :1].astype(jnp.int32) - 1, 0)               # (B,1)

    pad_b, pad_s = BP - B, SP - S
    if pad_b or pad_s:
        support_reps = jnp.pad(support_reps, ((0, pad_b), (0, pad_s), (0, 0), (0, 0)))
        sup_mask = jnp.pad(sup_mask, ((0, pad_b), (0, pad_s), (0, 0), (0, 0)))
        sup_lab = jnp.pad(sup_lab, ((0, pad_b), (0, pad_s), (0, 0), (0, 0)),
                          constant_values=-1)
    if pad_b:
        test_first = jnp.pad(test_first, ((0, pad_b), (0, 0), (0, 0)))
        tags = jnp.pad(tags, ((0, pad_b), (0, 0)))

    slab = pl.pallas_call(
        functools.partial(_fewshot_intent_kernel, num_tags=T),
        out_shape=jax.ShapeDtypeStruct((BP, WPAD), jnp.float32),
        grid_spec=pltpu.PrefetchScalarGridSpec(
            num_scalar_prefetch=0,
            grid=(n_b, n_s),
            in_specs=[
                pl.BlockSpec((tb, s_blk, L, D), lambda b, s: (b, s, 0, 0)),  # support reps
                pl.BlockSpec((tb, s_blk, 1, L), lambda b, s: (b, s, 0, 0)),  # support mask
                pl.BlockSpec((tb, s_blk, 1, 1), lambda b, s: (b, s, 0, 0)),  # int labels
                pl.BlockSpec((tb, 1, D),        lambda b, s: (b, 0, 0)),     # first test token
                pl.BlockSpec((tb, 1),           lambda b, s: (b, 0)),        # CE targets
            ],
            out_specs=pl.BlockSpec((tb, WPAD), lambda b, s: (b, 0)),         # emission|loss slab
            scratch_shapes=[pltpu.VMEM((tb, WPAD), jnp.float32),             # num accumulator
                            pltpu.VMEM((tb, WPAD), jnp.float32)],            # count accumulator
        ),
        compiler_params=pltpu.CompilerParams(
            dimension_semantics=("parallel", "arbitrary"),
            vmem_limit_bytes=vmem_limit),
    )(support_reps, sup_mask, sup_lab, test_first, tags)

    emission = slab[:B, :T]
    loss = jnp.mean(slab[:B, T])
    return loss, emission


def _reference_forward(test_reps, support_reps, support_output_mask, test_target,
                       support_target):
    """Pure-JAX reference of the same forward math (for the self-check)."""
    B, S, L, D = support_reps.shape
    T = support_target.shape[-1]
    m = support_output_mask.astype(jnp.float32)
    sr = support_reps.astype(jnp.float32)
    sent = (sr * m[..., None]).sum(2) / jnp.maximum(m.sum(2, keepdims=True), 1.0)   # (B,S,D)
    tgt = support_target[:, :, 0, :].astype(jnp.float32)                            # (B,S,T)
    proto = jnp.einsum('bst,bsd->btd', tgt, sent) / jnp.maximum(
        tgt.sum(1)[:, :, None], 1.0)                                                # (B,T,D)
    test_sent = test_reps[:, 0, :].astype(jnp.float32)
    emis = jnp.einsum('bd,btd->bt', test_sent, proto)
    tags = jnp.maximum(test_target[:, 0] - 1, 0)
    lse = jax.nn.logsumexp(emis, axis=-1)
    picked = jnp.take_along_axis(emis, tags[:, None], axis=-1)[:, 0]
    return jnp.mean(lse - picked), emis


if __name__ == "__main__":
    def make_inputs(key, B, Lt, D, S, L, M, T, dtype=jnp.float32):
        k1, k2, k3, k4, k5 = jax.random.split(key, 5)
        test_reps = jax.random.normal(k1, (B, Lt, D), dtype=dtype)
        test_output_mask = jnp.ones((B, Lt), dtype=jnp.float32)
        support_reps = jax.random.normal(k2, (B, S, L, D), dtype=dtype)
        support_output_mask = (jax.random.uniform(k3, (B, S, L)) > 0.3).astype(jnp.float32)
        support_output_mask = support_output_mask.at[:, :, 0].set(1.0)   # >=1 valid token
        # test targets are 1-indexed (0 reserved for pad) -> relu(t - 1) in [0, T-1]
        test_target = jax.random.randint(k4, (B, M), 1, T + 1, dtype=jnp.int32)
        support_labels = jax.random.randint(k5, (B, S), 0, T, dtype=jnp.int32)
        support_target = jax.nn.one_hot(support_labels, T, dtype=jnp.float32).reshape(B, S, M, T)
        return (test_reps, test_output_mask, support_reps, support_output_mask,
                test_target, support_target)

    fwd = jax.jit(few_shot_text_classifier_forward,
                  static_argnames=("batch_tile", "support_tile"))

    key = jax.random.PRNGKey(0)
    configs = [
        # (B, Lt, D, S, L, M, T, batch_tile, support_tile)
        (2, 8, 32, 8, 16, 1, 4, None, None),     # single grid step (auto tiling)
        (2, 8, 32, 20, 16, 1, 4, None, 8),       # support-axis grid (n_s = 3, padded S)
        (12, 8, 32, 8, 16, 1, 5, None, None),    # batch-axis grid (tb = 8, padded batch)
    ]
    for i, (B, Lt, D, S, L, M, T, bt, st) in enumerate(configs):
        key, sub = jax.random.split(key)
        args = make_inputs(sub, B, Lt, D, S, L, M, T)
        loss, emission = fwd(*args, batch_tile=bt, support_tile=st)
        jax.block_until_ready((loss, emission))

        assert emission.shape == (B, T)
        assert loss.shape == ()
        assert bool(jnp.isfinite(loss))

        ref_loss, ref_emis = _reference_forward(args[0], args[2], args[3], args[4], args[5])
        assert bool(jnp.allclose(emission, ref_emis, atol=1e-3, rtol=1e-3)), \
            f"config {i}: emission mismatch"
        assert bool(jnp.allclose(loss, ref_loss, atol=1e-3, rtol=1e-3)), \
            f"config {i}: loss mismatch"

    # TODO(synk): decoder.decode + add_back_pad_label (argmax/Viterbi + host-side list
    # mutation) is a host-side inference path, not implemented as a kernel.
    print("KERNEL_OK")
</pallas_src>

<mosaic_0001>
module attributes {stable_mosaic.version = 11 : i64} {
  func.func @_fewshot_intent_kernel(%arg0: i32, %arg1: i32, %arg2: memref<2x8x16x32xf32, #tpu.memory_space<vmem>>, %arg3: memref<2x8x1x16xf32, #tpu.memory_space<vmem>>, %arg4: memref<2x8x1x1xi32, #tpu.memory_space<vmem>>, %arg5: memref<2x1x32xf32, #tpu.memory_space<vmem>>, %arg6: memref<2x1xi32, #tpu.memory_space<vmem>>, %arg7: memref<2x128xf32, #tpu.memory_space<vmem>>, %arg8: memref<2x128xf32, #tpu.memory_space<vmem>>, %arg9: memref<2x128xf32, #tpu.memory_space<vmem>>) attributes {dimension_semantics = [#tpu.dimension_semantics<parallel>, #tpu.dimension_semantics<arbitrary>], iteration_bounds = array<i64: 1, 1>, scalar_prefetch = 0 : i64, scratch_operands = 2 : i64, tpu.core_type = #tpu.core_type<tc>, window_params = [{transform_indices = @transform_0, window_bounds = array<i64: 2, 8, 16, 32>}, {transform_indices = @transform_1, window_bounds = array<i64: 2, 8, 1, 16>}, {transform_indices = @transform_2, window_bounds = array<i64: 2, 8, 1, 1>}, {transform_indices = @transform_3, window_bounds = array<i64: 2, 1, 32>}, {transform_indices = @transform_4, window_bounds = array<i64: 2, 1>}, {transform_indices = @transform_5, window_bounds = array<i64: 2, 128>}]} {
    %c0_i32 = arith.constant 0 : i32
    %0 = arith.cmpi eq, %arg1, %c0_i32 : i32
    %1 = arith.extui %0 : i1 to i32
    %c0_i32_0 = arith.constant 0 : i32
    %2 = arith.cmpi ne, %1, %c0_i32_0 : i32
    scf.if %2 {
      %cst_32 = arith.constant 0.000000e+00 : f32
      %43 = vector.broadcast %cst_32 : f32 to vector<2x128xf32>
      %c0_33 = arith.constant 0 : index
      %c0_34 = arith.constant 0 : index
      %44 = vector.load %arg8[%c0_33, %c0_34] : memref<2x128xf32, #tpu.memory_space<vmem>>, vector<2x128xf32>
      tpu.vector_store %arg8[%c0_33, %c0_34], %43 {strides = array<i32>} : memref<2x128xf32, #tpu.memory_space<vmem>>, vector<2x128xf32>,
      %cst_35 = arith.constant 0.000000e+00 : f32
      %45 = vector.broadcast %cst_35 : f32 to vector<2x128xf32>
      %c0_36 = arith.constant 0 : index
      %c0_37 = arith.constant 0 : index
      %46 = vector.load %arg9[%c0_36, %c0_37] : memref<2x128xf32, #tpu.memory_space<vmem>>, vector<2x128xf32>
      tpu.vector_store %arg9[%c0_36, %c0_37], %45 {strides = array<i32>} : memref<2x128xf32, #tpu.memory_space<vmem>>, vector<2x128xf32>,
    } else {
    }
    %c0 = arith.constant 0 : index
    %c0_1 = arith.constant 0 : index
    %c0_2 = arith.constant 0 : index
    %c0_3 = arith.constant 0 : index
    %3 = vector.load %arg3[%c0, %c0_1, %c0_2, %c0_3] : memref<2x8x1x16xf32, #tpu.memory_space<vmem>>, vector<2x8x1x16xf32>
    %cst = arith.constant dense<0.000000e+00> : vector<2x8x1xf32>
    %4 = vector.multi_reduction <add>, %3, %cst [3] : vector<2x8x1x16xf32> to vector<2x8x1xf32>
    %5 = vector.shape_cast %4 : vector<2x8x1xf32> to vector<2x8x1x1xf32>
    %cst_4 = arith.constant 1.000000e+00 : f32
    %6 = vector.broadcast %cst_4 : f32 to vector<2x8x1x1xf32>
    %7 = arith.maximumf %5, %6 : vector<2x8x1x1xf32>
    %8 = vector.broadcast %7 : vector<2x8x1x1xf32> to vector<2x8x1x16xf32>
    %9 = arith.divf %3, %8 : vector<2x8x1x16xf32>
    %c0_5 = arith.constant 0 : index
    %c0_6 = arith.constant 0 : index
    %c0_7 = arith.constant 0 : index
    %c0_8 = arith.constant 0 : index
    %10 = vector.load %arg2[%c0_5, %c0_6, %c0_7, %c0_8] : memref<2x8x16x32xf32, #tpu.memory_space<vmem>>, vector<2x8x16x32xf32>
    %11 = vector.shape_cast %10 : vector<2x8x16x32xf32> to vector<16x16x32xf32>
    %12 = vector.shape_cast %9 : vector<2x8x1x16xf32> to vector<16x1x16xf32>
    "tpu.trace_start"() <{level = 10 : i32, message = "gol,gld->god"}> : () -> ()
    %cst_9 = arith.constant dense<0.000000e+00> : vector<16x1x32xf32>
    %13 = tpu.matmul %12, %11, %cst_9 {dimension_numbers = #tpu.dot_dimension_numbers<[2], [1], [1], [2], [0, 0, 0, 1, 1, 2], [0], [0]>} : vector<16x1x16xf32>, vector<16x16x32xf32>, vector<16x1x32xf32> -> vector<16x1x32xf32>
    "tpu.trace_stop"() : () -> ()
    %14 = vector.shape_cast %13 : vector<16x1x32xf32> to vector<2x8x1x32xf32>
    %c0_10 = arith.constant 0 : index
    %c0_11 = arith.constant 0 : index
    %c0_12 = arith.constant 0 : index
    %15 = vector.load %arg5[%c0_10, %c0_11, %c0_12] : memref<2x1x32xf32, #tpu.memory_space<vmem>>, vector<2x1x32xf32>
    %16 = vector.shape_cast %15 : vector<2x1x32xf32> to vector<2x1x1x32xf32>
    %17 = vector.broadcast %16 : vector<2x1x1x32xf32> to vector<2x8x1x32xf32>
    %18 = arith.mulf %14, %17 : vector<2x8x1x32xf32>
    %cst_13 = arith.constant dense<0.000000e+00> : vector<2x8x1xf32>
    %19 = vector.multi_reduction <add>, %18, %cst_13 [3] : vector<2x8x1x32xf32> to vector<2x8x1xf32>
    %20 = vector.shape_cast %19 : vector<2x8x1xf32> to vector<2x8x1x1xf32>
    %c0_14 = arith.constant 0 : index
    %c0_15 = arith.constant 0 : index
    %c0_16 = arith.constant 0 : index
    %c0_17 = arith.constant 0 : index
    %21 = vector.load %arg4[%c0_14, %c0_15, %c0_16, %c0_17] : memref<2x8x1x1xi32, #tpu.memory_space<vmem>>, vector<2x8x1x1xi32>
    %22 = tpu.iota {dimensions = array<i32: 3>} : vector<2x8x1x128xi32>
    %23 = vector.broadcast %21 : vector<2x8x1x1xi32> to vector<2x8x1x128xi32>
    %24 = arith.cmpi eq, %22, %23 : vector<2x8x1x128xi32>
    %cst_18 = arith.constant 1.000000e+00 : f32
    %cst_19 = arith.constant 0.000000e+00 : f32
    %25 = vector.broadcast %cst_18 : f32 to vector<2x8x1x128xf32>
    %26 = vector.broadcast %cst_19 : f32 to vector<2x8x1x128xf32>
    %27 = arith.select %24, %25, %26 : vector<2x8x1x128xi1>, vector<2x8x1x128xf32>
    %c0_20 = arith.constant 0 : index
    %c0_21 = arith.constant 0 : index
    %28 = vector.load %arg8[%c0_20, %c0_21] : memref<2x128xf32, #tpu.memory_space<vmem>>, vector<2x128xf32>
    %29 = vector.broadcast %20 : vector<2x8x1x1xf32> to vector<2x8x1x128xf32>
    %30 = arith.mulf %29, %27 : vector<2x8x1x128xf32>
    %cst_22 = arith.constant dense<0.000000e+00> : vector<2x1x128xf32>
    %31 = vector.multi_reduction <add>, %30, %cst_22 [1] : vector<2x8x1x128xf32> to vector<2x1x128xf32>
    %32 = vector.shape_cast %31 : vector<2x1x128xf32> to vector<2x128xf32>
    %33 = arith.addf %28, %32 : vector<2x128xf32>
    %c0_23 = arith.constant 0 : index
    %c0_24 = arith.constant 0 : index
    %34 = vector.load %arg8[%c0_23, %c0_24] : memref<2x128xf32, #tpu.memory_space<vmem>>, vector<2x128xf32>
    tpu.vector_store %arg8[%c0_23, %c0_24], %33 {strides = array<i32>} : memref<2x128xf32, #tpu.memory_space<vmem>>, vector<2x128xf32>,
    %c0_25 = arith.constant 0 : index
    %c0_26 = arith.constant 0 : index
    %35 = vector.load %arg9[%c0_25, %c0_26] : memref<2x128xf32, #tpu.memory_space<vmem>>, vector<2x128xf32>
    %cst_27 = arith.constant dense<0.000000e+00> : vector<2x1x128xf32>
    %36 = vector.multi_reduction <add>, %27, %cst_27 [1] : vector<2x8x1x128xf32> to vector<2x1x128xf32>
    %37 = vector.shape_cast %36 : vector<2x1x128xf32> to vector<2x128xf32>
    %38 = arith.addf %35, %37 : vector<2x128xf32>
    %c0_28 = arith.constant 0 : index
    %c0_29 = arith.constant 0 : index
    %39 = vector.load %arg9[%c0_28, %c0_29] : memref<2x128xf32, #tpu.memory_space<vmem>>, vector<2x128xf32>
    tpu.vector_store %arg9[%c0_28, %c0_29], %38 {strides = array<i32>} : memref<2x128xf32, #tpu.memory_space<vmem>>, vector<2x128xf32>,
    %c0_i32_30 = arith.constant 0 : i32
    %40 = arith.cmpi eq, %arg1, %c0_i32_30 : i32
    %41 = arith.extui %40 : i1 to i32
    %c0_i32_31 = arith.constant 0 : i32
    %42 = arith.cmpi ne, %41, %c0_i32_31 : i32
    scf.if %42 {
      %c0_32 = arith.constant 0 : index
      %c0_33 = arith.constant 0 : index
      %43 = vector.load %arg8[%c0_32, %c0_33] : memref<2x128xf32, #tpu.memory_space<vmem>>, vector<2x128xf32>
      %c0_34 = arith.constant 0 : index
      %c0_35 = arith.constant 0 : index
      %44 = vector.load %arg9[%c0_34, %c0_35] : memref<2x128xf32, #tpu.memory_space<vmem>>, vector<2x128xf32>
      %cst_36 = arith.constant 1.000000e+00 : f32
      %45 = vector.broadcast %cst_36 : f32 to vector<2x128xf32>
      %46 = arith.maximumf %44, %45 : vector<2x128xf32>
      %47 = arith.divf %43, %46 : vector<2x128xf32>
      %48 = tpu.iota {dimensions = array<i32: 1>} : vector<2x128xi32>
      %c4_i32 = arith.constant 4 : i32
      %49 = vector.broadcast %c4_i32 : i32 to vector<2x128xi32>
      %50 = arith.cmpi slt, %48, %49 : vector<2x128xi32>
      %cst_37 = arith.constant -1.000000e+30 : f32
      %51 = vector.broadcast %cst_37 : f32 to vector<2x128xf32>
      %52 = arith.select %50, %47, %51 : vector<2x128xi1>, vector<2x128xf32>
      %cst_38 = arith.constant dense<0xFF800000> : vector<2xf32>
      %53 = vector.multi_reduction <maximumf>, %52, %cst_38 [1] : vector<2x128xf32> to vector<2xf32>
      %54 = vector.shape_cast %53 : vector<2xf32> to vector<2x1xf32>
      %55 = vector.broadcast %54 : vector<2x1xf32> to vector<2x128xf32>
      %56 = arith.subf %52, %55 : vector<2x128xf32>
      %57 = math.exp %56 : vector<2x128xf32>
      %cst_39 = arith.constant dense<0.000000e+00> : vector<2xf32>
      %58 = vector.multi_reduction <add>, %57, %cst_39 [1] : vector<2x128xf32> to vector<2xf32>
      %59 = vector.shape_cast %58 : vector<2xf32> to vector<2x1xf32>
      %60 = math.log %59 : vector<2x1xf32>
      %61 = arith.addf %54, %60 : vector<2x1xf32>
      %c0_40 = arith.constant 0 : index
      %c0_41 = arith.constant 0 : index
      %62 = vector.load %arg6[%c0_40, %c0_41] : memref<2x1xi32, #tpu.memory_space<vmem>>, vector<2x1xi32>
      %63 = vector.broadcast %62 : vector<2x1xi32> to vector<2x128xi32>
      %64 = arith.cmpi eq, %48, %63 : vector<2x128xi32>
      %cst_42 = arith.constant 0.000000e+00 : f32
      %65 = vector.broadcast %cst_42 : f32 to vector<2x128xf32>
      %66 = arith.select %64, %47, %65 : vector<2x128xi1>, vector<2x128xf32>
      %cst_43 = arith.constant dense<0.000000e+00> : vector<2xf32>
      %67 = vector.multi_reduction <add>, %66, %cst_43 [1] : vector<2x128xf32> to vector<2xf32>
      %68 = vector.shape_cast %67 : vector<2xf32> to vector<2x1xf32>
      %69 = arith.subf %61, %68 : vector<2x1xf32>
      %c4_i32_44 = arith.constant 4 : i32
      %70 = vector.broadcast %c4_i32_44 : i32 to vector<2x128xi32>
      %71 = arith.cmpi eq, %48, %70 : vector<2x128xi32>
      %cst_45 = arith.constant 0.000000e+00 : f32
      %72 = vector.broadcast %cst_45 : f32 to vector<2x128xf32>
      %73 = arith.select %50, %47, %72 : vector<2x128xi1>, vector<2x128xf32>
      %74 = vector.shape_cast %69 : vector<2x1xf32> to vector<2x1xf32>
      %75 = vector.broadcast %74 : vector<2x1xf32> to vector<2x128xf32>
      %76 = arith.select %71, %75, %73 : vector<2x128xi1>, vector<2x128xf32>
      %c0_46 = arith.constant 0 : index
      %c0_47 = arith.constant 0 : index
      %77 = vector.load %arg7[%c0_46, %c0_47] : memref<2x128xf32, #tpu.memory_space<vmem>>, vector<2x128xf32>
      tpu.vector_store %arg7[%c0_46, %c0_47], %76 {strides = array<i32>} : memref<2x128xf32, #tpu.memory_space<vmem>>, vector<2x128xf32>,
    } else {
    }
    return
  }
  func.func @transform_0(%arg0: i32, %arg1: i32) -> (i32, i32, i32, i32) {
    %c0_i32 = arith.constant 0 : i32
    %c0_i32_0 = arith.constant 0 : i32
    %c0_i32_1 = arith.constant 0 : i32
    return %arg0, %arg1, %c0_i32, %c0_i32_0 : i32, i32, i32, i32
  }
  func.func @transform_1(%arg0: i32, %arg1: i32) -> (i32, i32, i32, i32) {
    %c0_i32 = arith.constant 0 : i32
    %c0_i32_0 = arith.constant 0 : i32
    %c0_i32_1 = arith.constant 0 : i32
    return %arg0, %arg1, %c0_i32, %c0_i32_0 : i32, i32, i32, i32
  }
  func.func @transform_2(%arg0: i32, %arg1: i32) -> (i32, i32, i32, i32) {
    %c0_i32 = arith.constant 0 : i32
    %c0_i32_0 = arith.constant 0 : i32
    %c0_i32_1 = arith.constant 0 : i32
    return %arg0, %arg1, %c0_i32, %c0_i32_0 : i32, i32, i32, i32
  }
  func.func @transform_3(%arg0: i32, %arg1: i32) -> (i32, i32, i32) {
    %c0_i32 = arith.constant 0 : i32
    %c0_i32_0 = arith.constant 0 : i32
    %c0_i32_1 = arith.constant 0 : i32
    return %arg0, %c0_i32, %c0_i32_0 : i32, i32, i32
  }
  func.func @transform_4(%arg0: i32, %arg1: i32) -> (i32, i32) {
    %c0_i32 = arith.constant 0 : i32
    %c0_i32_0 = arith.constant 0 : i32
    return %arg0, %c0_i32 : i32, i32
  }
  func.func @transform_5(%arg0: i32, %arg1: i32) -> (i32, i32) {
    %c0_i32 = arith.constant 0 : i32
    %c0_i32_0 = arith.constant 0 : i32
    return %arg0, %c0_i32 : i32, i32
  }
}

</mosaic_0001>

<bundles_post_ra>
// kernel: few_shot_text_classifier_forward.1
= control target key start
LH: loop header
LB: loop body
LE: loop exit
PB: predicated region body
PF: predicated region fallthrough
CT: control target
= control target key end

     0   :  { %10 = vsyncpa [#allocation5], 0  ;;  %s1165_s21 = smov [#allocation4]   ;;  %s1166_s23 = smov 128   ;;  %s2000_s0 = inlined_call_operand.hbm [shape: f32[2,8,16,32], index: 0, kind: input, shape index: {}]   ;;  %s2001_s1 = inlined_call_operand.vmem [shape: f32[2,8,1,16], index: 1, kind: input, shape index: {}]   ;;  %s2002_s2 = inlined_call_operand.vmem [shape: s32[2,8,1,1], index: 2, kind: input, shape index: {}]   ;;  %s2003_s3 = inlined_call_operand.vmem [shape: f32[2,1,32], index: 3, kind: input, shape index: {}]   ;;  %s2004_s4 = inlined_call_operand.vmem [shape: s32[2,1], index: 4, kind: input, shape index: {}]   ;;  %s2005_s5 = inlined_call_operand.vmem [shape: f32[2,128], index: 5, kind: output, shape index: {}]  }
   0x1   :  { %s15_s20 = sshll.u32 %s2000_s0, 4  ;;  %s17_s22 = sshll.u32 %s1165_s21, 4  ;;  %s16_s20 = int_to_ptr.hbm [resolvable:$true] %s15_s20  ;;  %s18_s22 = int_to_ptr.vmem [resolvable:$true] %s17_s22 }
   0x2   :  { %s1167_s24 = smov 8  }
   0x3   :  { %23 = dma.hbm_to_vmem [thread:$0]  %s16_s20, 4096, %s18_s22, [#allocation5], %s1166_s23, %s1166_s23, %s1167_s24  }
   0x4   :  { %1163 = dma.done.wait [#allocation5], 4096  }
   0x5   :  { %1164 = vsyncadd [#allocation5], 4294963200  ;;  %vm58_vm0 = vcmask 122880   ;;  %v1206_v0 = vld [vmem:[%s2001_s1 + $0x6] sm:$0x1]  ;;  %v1168_v32 = vmov 0  }
   0x6   :  { %v1211_v1 = vld [vmem:[%s2001_s1 + $0x3] sm:$0x1]  ;;  %v1216_v2 = vld [vmem:[%s2001_s1 + $0x2] sm:$0x1]  ;;  %v77_v3 = vsel %vm58_vm0, %v1206_v0, 0.0  ;;  %1098 = vset.pattern.permute.xlu1 %v1168_v32  ;;  %1100 = vset.pattern.permute.xlu0 %v1168_v32  ;;  %v368_v35 = vld [vmem:[#allocation4 + $0x28] sm:$0xff] }
   0x7   :  { %v68_v4 = vsel %vm58_vm0, %v1211_v1, 0.0  ;;  %v65_v5 = vsel %vm58_vm0, %v1216_v2, 0.0  ;;  %78 = vadd.xlane.f32.xlu2 %v77_v3  ;;  %v1227_v6 = vld [vmem:[%s2001_s1 + $0x4] sm:$0x1]  ;;  %v1232_v7 = vld [vmem:[%s2001_s1 + $0x1] sm:$0x1]  ;;  %459 = vmatpush.msra.mxu2 %v368_v35 }
   0x8   :  { %69 = vadd.xlane.f32.xlu1 %v68_v4  ;;  %66 = vadd.xlane.f32.xlu0 %v65_v5  ;;  %v1237_v8 = vld [vmem:[%s2001_s1] sm:$0x1]  ;;  %v71_v9 = vsel %vm58_vm0, %v1227_v6, 0.0  ;;  %v62_v10 = vsel %vm58_vm0, %v1232_v7, 0.0  ;;  %v1248_v12 = vld [vmem:[%s2001_s1 + $0xa] sm:$0x1] }
   0x9   :  { %v59_v11 = vsel %vm58_vm0, %v1237_v8, 0.0  ;;  %v1253_v13 = vld [vmem:[%s2001_s1 + $0x5] sm:$0x1]  ;;  %v1258_v14 = vld [vmem:[%s2001_s1 + $0x7] sm:$0x1]  ;;  %v89_v15 = vsel %vm58_vm0, %v1248_v12, 0.0  ;;  %1099 = vset.pattern.permute.xlu2 %v1168_v32 }
   0xa   :  { %v74_v16 = vsel %vm58_vm0, %v1253_v13, 0.0  ;;  %v80_v17 = vsel %vm58_vm0, %v1258_v14, 0.0  ;;  %v1269_v18 = vld [vmem:[%s2001_s1 + $0x9] sm:$0x1]  ;;  %v1274_v19 = vld [vmem:[%s2001_s1 + $0xb] sm:$0x1] }
   0xb   :  { %v1279_v20 = vld [vmem:[%s2001_s1 + $0x8] sm:$0x1]  ;;  %v86_v21 = vsel %vm58_vm0, %v1269_v18, 0.0  ;;  %v92_v22 = vsel %vm58_vm0, %v1274_v19, 0.0  ;;  %v1290_v24 = vld [vmem:[%s2001_s1 + $0xf] sm:$0x1] }
   0xc   :  { %v83_v23 = vsel %vm58_vm0, %v1279_v20, 0.0  ;;  %v1295_v25 = vld [vmem:[%s2001_s1 + $0xc] sm:$0x1]  ;;  %v1300_v26 = vld [vmem:[%s2001_s1 + $0xe] sm:$0x1]  ;;  %v104_v27 = vsel %vm58_vm0, %v1290_v24, 0.0 }
   0xd   :  { %v95_v28 = vsel %vm58_vm0, %v1295_v25, 0.0  ;;  %v101_v29 = vsel %vm58_vm0, %v1300_v26, 0.0  ;;  %v1311_v30 = vld [vmem:[%s2001_s1 + $0xd] sm:$0x1]  ;;  %v831_v33 = vld [vmem:[%s2002_s2] sm:$0x1] }
   0xe   :  { %v98_v31 = vsel %vm58_vm0, %v1311_v30, 0.0  ;;  %v833_v34 = vld [vmem:[%s2002_s2 + $0x2] sm:$0x1]  ;;  %v834_v37 = vld [vmem:[%s2002_s2 + $0x3] sm:$0x1]  ;;  %v367_v39 = vld [vmem:[#allocation4 + $0x20] sm:$0xff] }
   0xf   :  { %72 = vadd.xlane.f32.xlu2 %v71_v9  ;;  %v370_v36 = vld [vmem:[#allocation4 + $0x38] sm:$0xff]  ;;  %v839_v38 = vld [vmem:[%s2002_s2 + $0x8] sm:$0x1]  ;;  %v369_v40 = vld [vmem:[#allocation4 + $0x30] sm:$0xff]  ;;  %460 = vmatpush.msra.mxu2 %v367_v39  ;;  %vm395_vm1 = vcmask 130048  }
  0x10   :  { %63 = vadd.xlane.f32.xlu1 %v62_v10  ;;  %60 = vadd.xlane.f32.xlu0 %v59_v11  ;;  %v832_v41 = vld [vmem:[%s2002_s2 + $0x1] sm:$0x1]  ;;  %v364_v42 = vld [vmem:[#allocation4 + $0x8] sm:$0xff]  ;;  %v835_v47 = vld [vmem:[%s2002_s2 + $0x4] sm:$0x1] }
  0x11   :  { %482 = vmatpush.msra.mxu3 %v370_v36  ;;  %v366_v43 = vld [vmem:[#allocation4 + $0x18] sm:$0xff]  ;;  %v376_v44 = vld [vmem:[#allocation4 + $0x68] sm:$0xff]  ;;  %413 = vmatpush.msra.mxu0 %v364_v42  ;;  %v363_v51 = vld [vmem:[#allocation4] sm:$0xff] }
  0x12   :  { %436 = vmatpush.msra.mxu1 %v366_v43  ;;  %v843_v48 = vld [vmem:[%s2002_s2 + $0xc] sm:$0x1]  ;;  %551 = vmatpush.msrb.mxu2 %v376_v44  ;;  %v365_v52 = vld [vmem:[#allocation4 + $0x10] sm:$0xff]  ;;  %v375_v53 = vld [vmem:[#allocation4 + $0x60] sm:$0xff] }
  0x13   :  { %483 = vmatpush.msra.mxu3 %v369_v40  ;;  %414 = vmatpush.msra.mxu0 %v363_v51  ;;  %v374_v4 = vld [vmem:[#allocation4 + $0x58] sm:$0xff]  ;;  %v384_v35 = vld [vmem:[#allocation4 + $0xa8] sm:$0xff] }
  0x14   :  { %437 = vmatpush.msra.mxu1 %v365_v52  ;;  %552 = vmatpush.msrb.mxu2 %v375_v53  ;;  %v378_v51 = vld [vmem:[#allocation4 + $0x78] sm:$0xff]  ;;  %v372_v52 = vld [vmem:[#allocation4 + $0x48] sm:$0xff] }
  0x15   :  { %574 = vmatpush.msrb.mxu3 %v378_v51  ;;  %505 = vmatpush.msrb.mxu0 %v372_v52 }
  0x16   :  { %528 = vmatpush.msrb.mxu1 %v374_v4 }
  0x17   :  { %90 = vadd.xlane.f32.xlu2 %v89_v15 }
  0x18   :  { %75 = vadd.xlane.f32.xlu1 %v74_v16  ;;  %81 = vadd.xlane.f32.xlu0 %v80_v17 }
  0x1f   :  { %87 = vadd.xlane.f32.xlu2 %v86_v21 }
  0x20   :  { %93 = vadd.xlane.f32.xlu1 %v92_v22  ;;  %84 = vadd.xlane.f32.xlu0 %v83_v23 }
  0x27   :  { %105 = vadd.xlane.f32.xlu2 %v104_v27 }
  0x28   :  { %96 = vadd.xlane.f32.xlu1 %v95_v28  ;;  %102 = vadd.xlane.f32.xlu0 %v101_v29 }
  0x30   :  { %99 = vadd.xlane.f32.xlu0 %v98_v31 }
  0x3f   :  { %854 = vperm.xlu2 %1099, %v832_v41   ;;  %v840_v41 = vld [vmem:[%s2002_s2 + $0x9] sm:$0x1] }
  0x41   :  { %850 = vperm.xlu1 %1098, %v831_v33  }
  0x44   :  { %882 = vperm.xlu0 %1100, %v839_v38  }
  0x47   :  { %886 = vperm.xlu2 %1099, %v840_v41  }
  0x49   :  { %858 = vperm.xlu1 %1098, %v833_v34  }
  0x4c   :  { %898 = vperm.xlu0 %1100, %v843_v48  }
  0x51   :  { %862 = vperm.xlu1 %1098, %v834_v37  }
  0x59   :  { %866 = vperm.xlu1 %1098, %v835_v47   ;;  %v383_v47 = vld [vmem:[#allocation4 + $0xa0] sm:$0xff] }
  0x7a   :  { %v79_v45 = vpop.xlane.xlu2 %78 }
  0x7b   :  { %v70_v46 = vpop.xlane.xlu1 %69  ;;  %v67_v50 = vpop.xlane.xlu0 %66  ;;  %v1339_v55 = vmax.f32 %v79_v45, 1.0 }
  0x7c   :  { %v1336_v49 = vmax.f32 %v70_v46, 1.0  ;;  %v109_v54 = vmax.f32 %v67_v50, 1.0 }
  0x7d   :  { %v224_v17 = vand.u32 2147483648, %v1339_v55  ;;  %v222_v36 = vand.u32 2147483647, %v1339_v55  ;;  %vm218_vm12 = vweird.f32 %v1339_v55 }
  0x7e   :  { %1101 = vrcp.f32 %v1336_v49  ;;  %v162_v11 = vand.u32 2147483647, %v109_v54  ;;  %v164_v27 = vand.u32 2147483648, %v109_v54  ;;  %vm173_vm2 = vweird.f32 %v1336_v49 }
  0x7f   :  { %1103 = vrcp.f32 %v109_v54  ;;  %v177_v32 = vand.u32 2147483647, %v1336_v49  ;;  %v179_v33 = vand.u32 2147483648, %v1336_v49  ;;  %vm158_vm3 = vweird.f32 %v109_v54 }
  0x80   :  { %1105 = vrcp.f32 %v1339_v55  ;;  %vm1373_vm5 = vcmp.eq.f32.partialorder %v162_v11, 8.507059e+37  ;;  %v165_v44 = vor.u32 1.1754944e-38, %v164_v27  ;;  %v1393_v45 = vor.u32 1.1754944e-38, %v224_v17  ;;  %v371_v11 = vld [vmem:[#allocation4 + $0x40] sm:$0xff] }
  0x81   :  { %vm1404_vm8 = vcmp.eq.f32.partialorder %v177_v32, 8.507059e+37  ;;  %v180_v50 = vor.u32 1.1754944e-38, %v179_v33  ;;  %506 = vmatpush.msrb.mxu0 %v371_v11  ;;  %vm1478_vm15 = vcmp.eq.f32.partialorder %v222_v36, 8.507059e+37 }
  0x82   :  { %v73_v56 = vpop.xlane.xlu2 %72 }
  0x83   :  { %v64_v57 = vpop.xlane.xlu1 %63  ;;  %v1341_v58 = vmax.f32 %v73_v56, 1.0  ;;  %v61_v59 = vpop.xlane.xlu0 %60 }
  0x84   :  { %v1343_v60 = vpop.eup %1101  ;;  %v1346_v61 = vmax.f32 %v64_v57, 1.0  ;;  %v1348_v62 = vmax.f32 %v61_v59, 1.0  ;;  %v844_v59 = vld [vmem:[%s2002_s2 + $0xd] sm:$0x1] }
  0x85   :  { %v1350_v63 = vpop.eup %1103  ;;  %v169_v3 = vmul.f32 %v1343_v60, %v1336_v49  ;;  %1107 = vrcp.f32 %v1341_v58  ;;  %vm174_vm6 = vweird.f32 %v1343_v60  ;;  %v194_v46 = vand.u32 2147483648, %v1341_v58  ;;  %902 = vperm.xlu1 %1098, %v844_v59  }
  0x86   :  { %v154_v5 = vmul.f32 %v1350_v63, %v109_v54  ;;  %1109 = vrcp.f32 %v1348_v62  ;;  %v1359_v16 = vpop.eup %1105  ;;  %vm159_vm4 = vweird.f32 %v1350_v63  ;;  %vm1418_vm9 = vmor %vm173_vm2, %vm174_vm6  ;;  %vm128_vm10 = vweird.f32 %v1348_v62 }
  0x87   :  { %v170_v9 = vsub.f32 1.0, %v169_v3  ;;  %1111 = vrcp.f32 %v1346_v61  ;;  %v214_v38 = vmul.f32 %v1359_v16, %v1339_v55  ;;  %vm1400_vm7 = vmor %vm158_vm3, %vm159_vm4  ;;  %v837_v3 = vld [vmem:[%s2002_s2 + $0x6] sm:$0x1]  ;;  %vm219_vm11 = vweird.f32 %v1359_v16 }
  0x88   :  { %v155_v10 = vsub.f32 1.0, %v154_v5  ;;  %874 = vperm.xlu0 %1100, %v837_v3   ;;  %vm143_vm13 = vweird.f32 %v1346_v61  ;;  %vm188_vm6 = vweird.f32 %v1341_v58 }
  0x89   :  { %v171_v15 = vmul.f32 %v1343_v60, %v170_v9  ;;  %v215_v4 = vsub.f32 1.0, %v214_v38 }
  0x8a   :  { %v91_v21 = vpop.xlane.xlu2 %90  ;;  %v156_v23 = vmul.f32 %v1350_v63, %v155_v10  ;;  %v373_v10 = vld [vmem:[#allocation4 + $0x50] sm:$0xff] }
  0x8b   :  { %v76_v22 = vpop.xlane.xlu1 %75  ;;  %v1364_v28 = vmax.f32 %v91_v21, 1.0  ;;  %v82_v31 = vpop.xlane.xlu0 %81  ;;  %v172_v40 = vadd.f32 %v1343_v60, %v171_v15  ;;  %v377_v15 = vld [vmem:[#allocation4 + $0x70] sm:$0xff]  ;;  %529 = vmatpush.msrb.mxu1 %v373_v10  ;;  %v216_v41 = vmul.f32 %v1359_v16, %v215_v4 }
  0x8c   :  { %v1366_v29 = vmax.f32 %v76_v22, 1.0  ;;  %v1370_v34 = vpop.eup %1107  ;;  %v157_v39 = vadd.f32 %v1350_v63, %v156_v23  ;;  %v1412_v57 = vmax.f32 %v82_v31, 1.0  ;;  %575 = vmatpush.msrb.mxu3 %v377_v15 }
  0x8d   :  { %v1378_v37 = vpop.eup %1109  ;;  %1113 = vrcp.f32 %v1364_v28  ;;  %v1410_v53 = vmul.f32 %v1370_v34, %v1341_v58  ;;  %v176_v9 = vsel %vm1418_vm9, %v1343_v60, %v172_v40  ;;  %v132_v40 = vand.u32 2147483647, %v1348_v62 }
  0x8e   :  { %v1388_v42 = vpop.eup %1111  ;;  %v124_v43 = vmul.f32 %v1378_v37, %v1348_v62  ;;  %1115 = vrcp.f32 %v1366_v29  ;;  %v161_v49 = vsel %vm1400_vm7, %v1350_v63, %v157_v39  ;;  %v181_v21 = vsel %vm1404_vm8, %v180_v50, %v176_v9 }
  0x8f   :  { %v1430_v5 = vmul.f32 %v1388_v42, %v1346_v61  ;;  %v166_v17 = vsel %vm1373_vm5, %v165_v44, %v161_v49  ;;  %v182_v63 = vmul.f32 %v181_v21, %v1211_v1  ;;  %1117 = vrcp.f32 %v1412_v57  ;;  %vm1535_vm5 = vmor %vm218_vm12, %vm219_vm11 }
  0x90   :  { %v125_v56 = vsub.f32 1.0, %v124_v43  ;;  %v167_v60 = vmul.f32 %v166_v17, %v1216_v2  ;;  %v134_v2 = vand.u32 2147483648, %v1348_v62  ;;  %v147_v43 = vand.u32 2147483647, %v1346_v61 }
  0x91   :  { %1080 = vmatmul.msk.f32.vlgmr.msra.gmra.mxu3 %vm395_vm1, %v182_v63  ;;  %v149_v44 = vand.u32 2147483648, %v1346_v61  ;;  %v185_v48 = vsub.f32 1.0, %v1410_v53  ;;  %v284_v50 = vand.u32 2147483648, %v1364_v28  ;;  %v140_v51 = vsub.f32 1.0, %v1430_v5  ;;  %v386_v61 = vld [vmem:[#allocation4 + $0xb8] sm:$0xff] }
  0x92   :  { %v88_v22 = vpop.xlane.xlu2 %87  ;;  %v126_v27 = vmul.f32 %v1378_v37, %v125_v56  ;;  %1079 = vmatmul.msk.f32.vlgmr.msra.gmra.mxu2 %vm395_vm1, %v167_v60  ;;  %vm129_vm14 = vweird.f32 %v1378_v37  ;;  %vm1487_vm0 = vcmp.eq.f32.partialorder %v132_v40, 8.507059e+37  ;;  %v135_v3 = vor.u32 1.1754944e-38, %v134_v2  ;;  %v382_v53 = vld [vmem:[#allocation4 + $0x98] sm:$0xff]  ;;  %666 = vmatpush.msra.mxu3 %v386_v61  ;;  %v391_v61 = vld [vmem:[#allocation4 + $0xe0] sm:$0xff] }
  0x93   :  { %v94_v23 = vpop.xlane.xlu1 %93  ;;  %v1447_v31 = vmax.f32 %v88_v22, 1.0  ;;  %v85_v33 = vpop.xlane.xlu0 %84  ;;  %643 = vmatpush.msra.mxu2 %v384_v35  ;;  %v282_v4 = vand.u32 2147483647, %v1364_v28  ;;  %vm1492_vm2 = vcmp.eq.f32.partialorder %v147_v43, 8.507059e+37  ;;  %v150_v36 = vor.u32 1.1754944e-38, %v149_v44  ;;  %vm130_vm3 = vmor %vm128_vm10, %vm129_vm14 }
  0x94   :  { %v1449_v32 = vmax.f32 %v94_v23, 1.0  ;;  %v1451_v38 = vpop.eup %1113  ;;  %v1455_v39 = vmax.f32 %v85_v33, 1.0  ;;  %v127_v56 = vadd.f32 %v1378_v37, %v126_v27  ;;  %v217_v49 = vadd.f32 %v1359_v16, %v216_v41 }
  0x95   :  { %v1459_v1 = vpop.eup %1115  ;;  %1119 = vrcp.f32 %v1447_v31  ;;  %v274_v52 = vmul.f32 %v1451_v38, %v1364_v28  ;;  %644 = vmatpush.msra.mxu2 %v383_v47  ;;  %v1500_v10 = vmul.f32 %v1370_v34, %v185_v48  ;;  %v1502_v11 = vor.u32 1.1754944e-38, %v284_v50 }
  0x96   :  { %1121 = vrcp.f32 %v1449_v32  ;;  %v1484_v54 = vmul.f32 %v1459_v1, %v1366_v29  ;;  %v1497_v9 = vpop.eup %1117  ;;  %v209_v15 = vand.u32 2147483648, %v1366_v29  ;;  %v239_v17 = vand.u32 2147483648, %v1412_v57 }
  0x97   :  { %1123 = vrcp.f32 %v1455_v39  ;;  %v275_v22 = vsub.f32 1.0, %v274_v52  ;;  %v131_v23 = vsel %vm130_vm3, %v1378_v37, %v127_v56  ;;  %v141_v27 = vmul.f32 %v1388_v42, %v140_v51 }
  0x98   :  { %vm144_vm4 = vweird.f32 %v1388_v42  ;;  %v200_v33 = vsub.f32 1.0, %v1484_v54  ;;  %v267_v62 = vand.u32 2147483647, %v1447_v31  ;;  %v269_v40 = vand.u32 2147483648, %v1447_v31 }
  0x99   :  { %v1524_v2 = vmul.f32 %v1497_v9, %v1412_v57  ;;  %v136_v41 = vsel %vm1487_vm0, %v135_v3, %v131_v23  ;;  %v142_v43 = vadd.f32 %v1388_v42, %v141_v27  ;;  %vm145_vm7 = vmor %vm143_vm13, %vm144_vm4  ;;  %v221_v55 = vsel %vm1535_vm5, %v1359_v16, %v217_v49  ;;  %v838_v23 = vld [vmem:[%s2002_s2 + $0x7] sm:$0x1]  ;;  %v846_v27 = vld [vmem:[%s2002_s2 + $0xf] sm:$0x1] }
  0x9a   :  { %v106_v60 = vpop.xlane.xlu2 %105  ;;  %v137_v50 = vmul.f32 %v136_v41, %v1237_v8  ;;  %v276_v52 = vmul.f32 %v1451_v38, %v275_v22  ;;  %v841_v8 = vld [vmem:[%s2002_s2 + $0xa] sm:$0x1]  ;;  %v299_v3 = vand.u32 2147483648, %v1449_v32  ;;  %v226_v49 = vsel %vm1478_vm15, %v1393_v45, %v221_v55  ;;  %878 = vperm.xlu1 %1098, %v838_v23   ;;  %910 = vperm.xlu0 %1100, %v846_v27  }
  0x9b   :  { %v1510_v21 = vpop.eup %1119  ;;  %v1550_v51 = vmax.f32 %v106_v60, 1.0  ;;  %v146_v59 = vsel %vm145_vm7, %v1388_v42, %v142_v43  ;;  %v97_v22 = vpop.xlane.xlu1 %96  ;;  %890 = vperm.xlu2 %1099, %v841_v8   ;;  %v230_v5 = vsub.f32 1.0, %v1524_v2  ;;  %v227_v45 = vmul.f32 %v226_v49, %v1206_v0 }
  0x9c   :  { %v1515_v63 = vpop.eup %1121  ;;  %v259_v35 = vmul.f32 %v1510_v21, %v1447_v31  ;;  %1077 = vmatmul.msk.f32.vlgmr.msra.gmra.mxu0 %vm395_vm1, %v137_v50  ;;  %v151_v16 = vsel %vm1492_vm2, %v150_v36, %v146_v59  ;;  %v103_v42 = vpop.xlane.xlu0 %102  ;;  %vm203_vm8 = vweird.f32 %v1366_v29  ;;  %v1578_v43 = vor.u32 1.1754944e-38, %v269_v40  ;;  %v392_v50 = vld [vmem:[#allocation4 + $0xe8] sm:$0xff] }
  0x9d   :  { %v289_v37 = vmul.f32 %v1515_v63, %v1449_v32  ;;  %v1539_v47 = vpop.eup %1123  ;;  %1125 = vrcp.f32 %v1550_v51  ;;  %v152_v60 = vmul.f32 %v151_v16, %v1232_v7  ;;  %v297_v44 = vand.u32 2147483647, %v1449_v32  ;;  %v385_v7 = vld [vmem:[#allocation4 + $0xb0] sm:$0xff]  ;;  %1083 = vmatmul.msk.f32.vlgmr.msrb.gmra.mxu2 %vm395_vm1, %v227_v45 }
  0x9e   :  { %v260_v48 = vsub.f32 1.0, %v259_v35  ;;  %v244_v54 = vmul.f32 %v1539_v47, %v1455_v39  ;;  %v380_v35 = vld [vmem:[#allocation4 + $0x88] sm:$0xff]  ;;  %v254_v2 = vand.u32 2147483648, %v1455_v39  ;;  %vm279_vm9 = vweird.f32 %v1451_v38  ;;  %667 = vmatpush.msra.mxu3 %v385_v7  ;;  %735 = vmatpush.msrb.mxu2 %v392_v50 }
  0x9f   :  { %v290_v56 = vsub.f32 1.0, %v289_v37  ;;  %v379_v37 = vld [vmem:[#allocation4 + $0x80] sm:$0xff]  ;;  %597 = vmatpush.msra.mxu0 %v380_v35  ;;  %1078 = vmatmul.msk.f32.vlgmr.msra.gmra.mxu1 %vm395_vm1, %v152_v60  ;;  %v1587_v40 = vmax.f32 %v97_v22, 1.0  ;;  %v1592_v59 = vadd.f32 %v1451_v38, %v276_v52  ;;  %v201_v8 = vmul.f32 %v1459_v1, %v200_v33 }
  0xa0   :  { %v245_v36 = vsub.f32 1.0, %v244_v54  ;;  %v261_v41 = vmul.f32 %v1510_v21, %v260_v48  ;;  %v1589_v48 = vmax.f32 %v103_v42, 1.0  ;;  %v381_v54 = vld [vmem:[#allocation4 + $0x90] sm:$0xff]  ;;  %vm233_vm10 = vweird.f32 %v1412_v57  ;;  %620 = vmatpush.msra.mxu1 %v382_v53  ;;  %736 = vmatpush.msrb.mxu2 %v391_v61 }
  0xa1   :  { %v291_v0 = vmul.f32 %v1515_v63, %v290_v56  ;;  %v187_v56 = vadd.f32 %v1370_v34, %v1500_v10  ;;  %vm189_vm11 = vweird.f32 %v1370_v34  ;;  %598 = vmatpush.msra.mxu0 %v379_v37  ;;  %vm278_vm12 = vweird.f32 %v1364_v28  ;;  %v842_v10 = vld [vmem:[%s2002_s2 + $0xb] sm:$0x1] }
  0xa2   :  { %v246_v55 = vmul.f32 %v1539_v47, %v245_v36  ;;  %v231_v16 = vmul.f32 %v1497_v9, %v230_v5  ;;  %v1601_v49 = vor.u32 1.1754944e-38, %v299_v3  ;;  %v252_v52 = vand.u32 2147483647, %v1455_v39  ;;  %621 = vmatpush.msra.mxu1 %v381_v54  ;;  %vm1638_vm3 = vmor %vm188_vm6, %vm189_vm11 }
  0xa3   :  { %1127 = vrcp.f32 %v1587_v40  ;;  %v1608_v33 = vpop.eup %1125  ;;  %vm264_vm13 = vweird.f32 %v1510_v21  ;;  %vm249_vm14 = vweird.f32 %v1539_v47  ;;  %v1612_v22 = vor.u32 1.1754944e-38, %v254_v2  ;;  %894 = vperm.xlu2 %1099, %v842_v10   ;;  %v388_v10 = vld [vmem:[#allocation4 + $0xc8] sm:$0xff] }
  0xa4   :  { %1129 = vrcp.f32 %v1589_v48  ;;  %vm1617_vm15 = vcmp.eq.f32.partialorder %v282_v4, 8.507059e+37  ;;  %v1622_v42 = vadd.f32 %v1510_v21, %v261_v41  ;;  %v1625_v23 = vadd.f32 %v1515_v63, %v291_v0  ;;  %v100_v4 = vpop.xlane.xlu0 %99 }
  0xa5   :  { %v1629_v27 = vadd.f32 %v1539_v47, %v246_v55  ;;  %vm248_vm2 = vweird.f32 %v1455_v39  ;;  %v349_v5 = vmul.f32 %v1608_v33, %v1550_v51  ;;  %v312_v36 = vand.u32 2147483647, %v1587_v40 }
  0xa6   :  { %v191_v60 = vsel %vm1638_vm3, %v1370_v34, %v187_v56  ;;  %v192_v45 = vand.u32 2147483647, %v1341_v58  ;;  %v314_v35 = vand.u32 2147483648, %v1587_v40  ;;  %v195_v37 = vor.u32 1.1754944e-38, %v194_v46  ;;  %v390_v58 = vld [vmem:[#allocation4 + $0xd8] sm:$0xff] }
  0xa7   :  { %v350_v53 = vsub.f32 1.0, %v349_v5  ;;  %v202_v41 = vadd.f32 %v1459_v1, %v201_v8  ;;  %vm1654_vm6 = vcmp.eq.f32.partialorder %v252_v52, 8.507059e+37  ;;  %v342_v7 = vand.u32 2147483647, %v1589_v48 }
  0xa8   :  { %vm193_vm11 = vcmp.eq.f32.partialorder %v192_v45, 8.507059e+37  ;;  %vm204_vm3 = vweird.f32 %v1459_v1  ;;  %v207_v34 = vand.u32 2147483647, %v1366_v29  ;;  %v344_v0 = vand.u32 2147483648, %v1589_v48  ;;  %v836_v29 = vld [vmem:[%s2002_s2 + $0x5] sm:$0x1] }
  0xa9   :  { %v1661_v50 = vpop.eup %1127  ;;  %v196_v55 = vsel %vm193_vm11, %v195_v37, %v191_v60  ;;  %vm1666_vm5 = vmor %vm203_vm8, %vm204_vm3  ;;  %v232_v46 = vadd.f32 %v1497_v9, %v231_v16  ;;  %vm234_vm7 = vweird.f32 %v1497_v9  ;;  %vm1676_vm0 = vcmp.eq.f32.partialorder %v267_v62, 8.507059e+37 }
  0xaa   :  { %v1672_v54 = vpop.eup %1129  ;;  %vm1682_vm11 = vcmp.eq.f32.partialorder %v297_v44, 8.507059e+37  ;;  %v304_v61 = vmul.f32 %v1661_v50, %v1587_v40  ;;  %v197_v16 = vmul.f32 %v196_v55, %v1227_v6  ;;  %v206_v62 = vsel %vm1666_vm5, %v1459_v1, %v202_v41  ;;  %vm1701_vm8 = vmor %vm233_vm10, %vm234_vm7  ;;  %v387_v55 = vld [vmem:[#allocation4 + $0xc0] sm:$0xff] }
  0xab   :  { %v210_v52 = vor.u32 1.1754944e-38, %v209_v15  ;;  %v351_v44 = vmul.f32 %v1608_v33, %v350_v53  ;;  %v334_v5 = vmul.f32 %v1672_v54, %v1589_v48  ;;  %vm208_vm4 = vcmp.eq.f32.partialorder %v207_v34, 8.507059e+37  ;;  %vm1712_vm5 = vmor %vm278_vm12, %vm279_vm9  ;;  %870 = vperm.xlu2 %1099, %v836_v29  }
  0xac   :  { %vm353_vm3 = vweird.f32 %v1550_v51  ;;  %v305_v15 = vsub.f32 1.0, %v304_v61  ;;  %1081 = vmatmul.msk.f32.vlgmr.msrb.gmra.mxu0 %vm395_vm1, %v197_v16  ;;  %v236_v45 = vsel %vm1701_vm8, %v1497_v9, %v232_v46  ;;  %v237_v53 = vand.u32 2147483647, %v1412_v57  ;;  %vm1733_vm9 = vmor %vm248_vm2, %vm249_vm14 }
  0xad   :  { %v211_v60 = vsel %vm208_vm4, %v210_v52, %v206_v62  ;;  %v335_v37 = vsub.f32 1.0, %v334_v5  ;;  %v240_v28 = vor.u32 1.1754944e-38, %v239_v17  ;;  %v281_v34 = vsel %vm1712_vm5, %v1451_v38, %v1592_v59  ;;  %689 = vmatpush.msrb.mxu0 %v388_v10  ;;  %v393_v10 = vld [vmem:[#allocation4 + $0xf0] sm:$0xff] }
  0xae   :  { %v212_v41 = vmul.f32 %v211_v60, %v1253_v13  ;;  %v306_v13 = vmul.f32 %v1661_v50, %v305_v15  ;;  %vm238_vm10 = vcmp.eq.f32.partialorder %v237_v53, 8.507059e+37  ;;  %v286_v57 = vsel %vm1617_vm15, %v1502_v11, %v281_v34  ;;  %v855_v53 = vpop.permute.xlu2 %854 }
  0xaf   :  { %v1741_v17 = vmax.f32 %v100_v4, 1.0  ;;  %vm2040_vm12 = vweird.f32 %v1447_v31  ;;  %v336_v39 = vmul.f32 %v1672_v54, %v335_v37  ;;  %v241_v59 = vsel %vm238_vm10, %v240_v28, %v236_v45  ;;  %690 = vmatpush.msrb.mxu0 %v387_v55 }
  0xb0   :  { %vm1747_vm4 = vmor %vm2040_vm12, %vm264_vm13  ;;  %1082 = vmatmul.msk.f32.vlgmr.msrb.gmra.mxu1 %vm395_vm1, %v212_v41  ;;  %v287_v46 = vmul.f32 %v286_v57, %v1248_v12  ;;  %v251_v11 = vsel %vm1733_vm9, %v1539_v47, %v1629_v27  ;;  %vm2043_vm14 = vweird.f32 %v1515_v63  ;;  %vm2044_vm15 = vweird.f32 %v1449_v32  ;;  %v394_v12 = vld [vmem:[#allocation4 + $0xf8] sm:$0xff]  ;;  %v389_v47 = vld [vmem:[#allocation4 + $0xd0] sm:$0xff] }
  0xb1   :  { %vm1762_vm13 = vmor %vm2044_vm15, %vm2043_vm14  ;;  %v307_v3 = vadd.f32 %v1661_v50, %v306_v13  ;;  %vm339_vm2 = vweird.f32 %v1672_v54  ;;  %v242_v61 = vmul.f32 %v241_v59, %v1258_v14  ;;  %1131 = vrcp.f32 %v1741_v17  ;;  %712 = vmatpush.msrb.mxu1 %v390_v58 }
  0xb2   :  { %vm354_vm7 = vweird.f32 %v1608_v33  ;;  %vm2047_vm8 = vweird.f32 %v1661_v50  ;;  %vm2048_vm5 = vweird.f32 %v1587_v40  ;;  %vm1781_vm10 = vcmp.eq.f32.partialorder %v312_v36, 8.507059e+37  ;;  %1087 = vmatmul.msk.f32.vlgmr.msra.gmra.mxu2 %vm395_vm1, %v287_v46 }
  0xb3   :  { %vm1775_vm9 = vmor %vm2048_vm5, %vm2047_vm8  ;;  %v337_v27 = vadd.f32 %v1672_v54, %v336_v39  ;;  %v256_v16 = vsel %vm1654_vm6, %v1612_v22, %v251_v11  ;;  %1084 = vmatmul.msk.f32.vlgmr.msrb.gmra.mxu3 %vm395_vm1, %v242_v61  ;;  %v266_v36 = vsel %vm1747_vm4, %v1510_v21, %v1622_v42  ;;  %v296_v52 = vsel %vm1762_vm13, %v1515_v63, %v1625_v23  ;;  %v845_v42 = vld [vmem:[%s2002_s2 + $0xe] sm:$0x1]  ;;  %v851_v45 = vpop.permute.xlu1 %850 }
  0xb4   :  { %v257_v62 = vmul.f32 %v256_v16, %v1279_v20  ;;  %v311_v2 = vsel %vm1775_vm9, %v1661_v50, %v307_v3  ;;  %v315_v22 = vor.u32 1.1754944e-38, %v314_v35  ;;  %vm2053_vm6 = vweird.f32 %v1589_v48  ;;  %758 = vmatpush.msrb.mxu3 %v394_v12  ;;  %713 = vmatpush.msrb.mxu1 %v389_v47 }
  0xb5   :  { %vm1809_vm12 = vmor %vm2053_vm6, %vm339_vm2  ;;  %v345_v21 = vor.u32 1.1754944e-38, %v344_v0  ;;  %v271_v63 = vsel %vm1676_vm0, %v1578_v43, %v266_v36  ;;  %v301_v40 = vsel %vm1682_vm11, %v1601_v49, %v296_v52  ;;  %v352_v23 = vadd.f32 %v1608_v33, %v351_v44  ;;  %906 = vperm.xlu2 %1099, %v845_v42  }
  0xb6   :  { %vm343_vm4 = vcmp.eq.f32.partialorder %v342_v7, 8.507059e+37  ;;  %1085 = vmatmul.msk.f32.vlgmr.msra.gmra.mxu0 %vm395_vm1, %v257_v62  ;;  %v272_v35 = vmul.f32 %v271_v63, %v1269_v18  ;;  %v341_v43 = vsel %vm1809_vm12, %v1672_v54, %v337_v27  ;;  %v359_v49 = vand.u32 2147483648, %v1550_v51  ;;  %759 = vmatpush.msrb.mxu3 %v393_v10  ;;  %vm355_vm0 = vmor %vm353_vm3, %vm354_vm7  ;;  %v887_v41 = vpop.permute.xlu2 %886  ;;  %v883_v34 = vpop.permute.xlu0 %882 }
  0xb7   :  { %v316_v50 = vsel %vm1781_vm10, %v315_v22, %v311_v2  ;;  %v346_v0 = vsel %vm343_vm4, %v345_v21, %v341_v43  ;;  %v1132_v8 = vpop.eup %1131  ;;  %v357_v56 = vand.u32 2147483647, %v1550_v51  ;;  %v302_v48 = vmul.f32 %v301_v40, %v1274_v19 }
  0xb8   :  { %v347_v7 = vmul.f32 %v346_v0, %v1300_v26  ;;  %v319_v18 = vmul.f32 %v1132_v8, %v1741_v17  ;;  %1086 = vmatmul.msk.f32.vlgmr.msra.gmra.mxu1 %vm395_vm1, %v272_v35  ;;  %v317_v54 = vmul.f32 %v316_v50, %v1295_v25  ;;  %v356_v44 = vsel %vm355_vm0, %v1608_v33, %v352_v23  ;;  %v1887_v35 = vld [vmem:[%s2003_s3] sm:$0x1] }
  0xb9   :  { %v360_v5 = vor.u32 1.1754944e-38, %v359_v49  ;;  %vm358_vm11 = vcmp.eq.f32.partialorder %v357_v56, 8.507059e+37  ;;  %v329_v19 = vand.u32 2147483648, %v1741_v17  ;;  %vm324_vm14 = vweird.f32 %v1132_v8 }
  0xba   :  { %v320_v6 = vsub.f32 1.0, %v319_v18  ;;  %1091 = vmatmul.msk.f32.vlgmr.msrb.gmra.mxu2 %vm395_vm1, %v347_v7  ;;  %v327_v51 = vand.u32 2147483647, %v1741_v17  ;;  %vm323_vm3 = vweird.f32 %v1741_v17  ;;  %v856_v38 = vperm.slane %v855_v53, 0 }
  0xbb   :  { %1088 = vmatmul.msk.f32.vlgmr.msra.gmra.mxu3 %vm395_vm1, %v302_v48  ;;  %v361_v4 = vsel %vm358_vm11, %v360_v5, %v356_v44  ;;  %vm325_vm15 = vmor %vm323_vm3, %vm324_vm14  ;;  %v330_v25 = vor.u32 1.1754944e-38, %v329_v19  ;;  %v859_v37 = vpop.permute.xlu1 %858  ;;  %v888_v39 = vperm.slane %v887_v41, 0  ;;  %v847_v59 = vlaneseq }
  0xbc   :  { %v321_v26 = vmul.f32 %v1132_v8, %v320_v6  ;;  %v362_v33 = vmul.f32 %v361_v4, %v1290_v24  ;;  %vm328_vm13 = vcmp.eq.f32.partialorder %v327_v51, 8.507059e+37  ;;  %v884_v46 = vperm.slane %v883_v34, 0 }
  0xbd   :  { %v860_v11 = vperm.slane %v859_v37, 0  ;;  %v1858_v3 = vand.u32 127, %v847_v59  ;;  %vm782_vm8 = vcmask 253952   ;;  %v1169_v14 = vmov 0.0  }
  0xbe   :  { %1089 = vmatmul.msk.f32.vlgmr.msrb.gmra.mxu0 %vm395_vm1, %v317_v54  ;;  %v322_v29 = vadd.f32 %v1132_v8, %v321_v26  ;;  %v899_v9 = vpop.permute.xlu0 %898  ;;  %40 = vst [vmem:[#allocation2] sm:$0x3] %v1169_v14 }
  0xbf   :  { %v900_v32 = vperm.slane %v899_v9, 0  ;;  %vm922_vm7 = vcmp.eq.s32.totalorder %v1858_v3, %v888_v39  ;;  %vm921_vm5 = vcmp.eq.s32.totalorder %v1858_v3, %v884_v46  ;;  %41 = vst [vmem:[#allocation3] sm:$0x3] %v1169_v14  ;;  %vm915_vm9 = vcmp.eq.s32.totalorder %v1858_v3, %v860_v11 }
  0xc0   :  { %v326_v1 = vsel %vm325_vm15, %v1132_v8, %v322_v29  ;;  %v1871_v52 = vsel %vm922_vm7, 1.0, %v1169_v14  ;;  %v1874_v22 = vsel %vm915_vm9, 1.0, %v1169_v14  ;;  %v1876_v20 = vsel %vm921_vm5, 1.0, %v1169_v14 }
  0xc1   :  { %v331_v15 = vsel %vm328_vm13, %v330_v25, %v326_v1  ;;  %v1009_v50 = vadd.f32 %v1871_v52, %v1876_v20  ;;  %vm925_vm0 = vcmp.eq.s32.totalorder %v1858_v3, %v900_v32  ;;  %vm962_vm7 = vcmask 1040384  }
  0xc2   :  { %v332_v60 = vmul.f32 %v331_v15, %v1311_v30  ;;  %v852_v30 = vperm.slane %v851_v45, 0  ;;  %v1904_v6 = vsel %vm925_vm0, 1.0, %v1169_v14  ;;  %vm1068_vm0 = vcmp.eq.s32.totalorder %v1858_v3, 4 }
  0xc3   :  { %1092 = vmatmul.msk.f32.vlgmr.msrb.gmra.mxu3 %vm395_vm1, %v362_v33  ;;  %v863_v28 = vpop.permute.xlu1 %862 }
  0xc4   :  { %1090 = vmatmul.msk.f32.vlgmr.msrb.gmra.mxu1 %vm395_vm1, %v332_v60  ;;  %v864_v61 = vperm.slane %v863_v28, 0  ;;  %vm914_vm1 = vcmp.eq.s32.totalorder %v1858_v3, %v856_v38  ;;  %vm913_vm2 = vcmp.eq.s32.totalorder %v1858_v3, %v852_v30 }
  0xc5   :  { %v1863_v27 = vsel %vm914_vm1, 1.0, %v1169_v14  ;;  %v1865_v16 = vsel %vm913_vm2, 1.0, %v1169_v14  ;;  %vm996_vm2 = vcmask 1041409  }
  0xc6   :  { %v1002_v36 = vadd.f32 %v1863_v27, %v1865_v16  ;;  %vm916_vm6 = vcmp.eq.s32.totalorder %v1858_v3, %v864_v61 }
  0xc7   :  { %v1889_v49 = vsel %vm916_vm6, 1.0, %v1169_v14  ;;  %vm1043_vm6 = vcmp.lt.s32.totalorder %v1858_v3, 4 }
  0xc8   :  { %v1003_v40 = vadd.f32 %v1002_v36, %v1874_v22 }
  0xca   :  { %v1004_v0 = vadd.f32 %v1003_v40, %v1889_v49 }
  0xcb   :  { %v867_v58 = vpop.permute.xlu1 %866 }
  0xcc   :  { %v868_v47 = vperm.slane %v867_v58, 0 }
  0xce   :  { %vm917_vm4 = vcmp.eq.s32.totalorder %v1858_v3, %v868_v47 }
  0xcf   :  { %v1898_v18 = vsel %vm917_vm4, 1.0, %v1169_v14 }
  0xd0   :  { %v1005_v5 = vadd.f32 %v1004_v0, %v1898_v18 }
  0xf5   :  { %v891_v55 = vpop.permute.xlu2 %890 }
  0xf6   :  { %v892_v31 = vperm.slane %v891_v55, 0 }
  0xf7   :  { %v903_v57 = vpop.permute.xlu1 %902 }
  0xf8   :  { %vm923_vm10 = vcmp.eq.s32.totalorder %v1858_v3, %v892_v31  ;;  %v904_v2 = vperm.slane %v903_v57, 0 }
  0xf9   :  { %v1881_v42 = vsel %vm923_vm10, 1.0, %v1169_v14 }
  0xfa   :  { %v1856_v17 = vpop.permute.xlu0 %874  ;;  %v1010_v54 = vadd.f32 %v1009_v50, %v1881_v42  ;;  %vm926_vm14 = vcmp.eq.s32.totalorder %v1858_v3, %v904_v2 }
  0xfb   :  { %v876_v23 = vperm.slane %v1856_v17, 0  ;;  %v1914_v25 = vsel %vm926_vm14, 1.0, %v1169_v14 }
  0xfd   :  { %v895_v13 = vpop.permute.xlu2 %894  ;;  %vm919_vm15 = vcmp.eq.s32.totalorder %v1858_v3, %v876_v23 }
  0xfe   :  { %v896_v12 = vperm.slane %v895_v13, 0  ;;  %v1921_v15 = vsel %vm919_vm15, 1.0, %v1169_v14 }
 0x100   :  { %vm924_vm12 = vcmp.eq.s32.totalorder %v1858_v3, %v896_v12 }
 0x101   :  { %v1895_v8 = vsel %vm924_vm12, 1.0, %v1169_v14  ;;  %vm1045_vm12 = vcmask 1041408  }
 0x102   :  { %v1011_v26 = vadd.f32 %v1010_v54, %v1895_v8 }
 0x104   :  { %v1012_v29 = vadd.f32 %v1011_v26, %v1904_v6 }
 0x105   :  { %v871_v24 = vpop.permute.xlu2 %870 }
 0x106   :  { %v872_v10 = vperm.slane %v871_v24, 0  ;;  %v1013_v45 = vadd.f32 %v1012_v29, %v1914_v25  ;;  %v1001_v24 = vld [vmem:[#allocation3] sm:$0x3] }
 0x108   :  { %vm918_vm11 = vcmp.eq.s32.totalorder %v1858_v3, %v872_v10 }
 0x109   :  { %v1906_v19 = vsel %vm918_vm11, 1.0, %v1169_v14 }
 0x10a   :  { %v1006_v4 = vadd.f32 %v1005_v5, %v1906_v19 }
 0x10c   :  { %v879_v21 = vpop.permute.xlu1 %878  ;;  %v911_v63 = vpop.permute.xlu0 %910  ;;  %v1007_v41 = vadd.f32 %v1006_v4, %v1921_v15 }
 0x10d   :  { %v880_v48 = vperm.slane %v879_v21, 0  ;;  %v912_v7 = vperm.slane %v911_v63, 0 }
 0x10f   :  { %v907_v62 = vpop.permute.xlu2 %906  ;;  %vm920_vm13 = vcmp.eq.s32.totalorder %v1858_v3, %v880_v48  ;;  %vm928_vm1 = vcmp.eq.s32.totalorder %v1858_v3, %v912_v7 }
 0x110   :  { %v908_v43 = vperm.slane %v907_v62, 0  ;;  %v1925_v53 = vsel %vm920_vm13, 1.0, %v1169_v14  ;;  %v1927_v37 = vsel %vm928_vm1, 1.0, %v1169_v14  ;;  %v765_v62 = vld [vmem:[%s2003_s3 + $0x1] sm:$0x1] }
 0x111   :  { %v1008_v9 = vadd.f32 %v1007_v41, %v1925_v53 }
 0x112   :  { %vm927_vm3 = vcmp.eq.s32.totalorder %v1858_v3, %v908_v43 }
 0x113   :  { %v1917_v1 = vsel %vm927_vm3, 1.0, %v1169_v14 }
 0x114   :  { %v485_v56 = vpop.f32.mrf.mxu3  ;;  %v1014_v55 = vadd.f32 %v1013_v45, %v1917_v1 }
 0x115   :  { %v769_v44 = vmul.f32 %v1887_v35, %v485_v56  ;;  %v462_v17 = vpop.f32.mrf.mxu2 }
 0x116   :  { %v1015_v13 = vadd.f32 %v1014_v55, %v1927_v37  ;;  %v768_v39 = vmul.f32 %v1887_v35, %v462_v17 }
 0x117   :  { %v792_v51 = vsel %vm782_vm8, %v769_v44, 0.0 }
 0x118   :  { %793 = vadd.xlane.f32.xlu1 %v792_v51  ;;  %v1018_v38 = vsel %vm996_vm2, %v1015_v13, %v1008_v9  ;;  %v789_v46 = vsel %vm782_vm8, %v768_v39, 0.0  ;;  %v1058_v9 = vld [vmem:[%s2004_s4] sm:$0x3] }
 0x119   :  { %v416_v33 = vpop.f32.mrf.mxu0  ;;  %v1020_v30 = vadd.f32 %v1018_v38, %v1001_v24 }
 0x11a   :  { %v766_v60 = vmul.f32 %v1887_v35, %v416_v33 }
 0x11b   :  { %1021 = vst [vmem:[#allocation3] sm:$0x3] %v1020_v30 }
 0x11c   :  { %v439_v28 = vpop.f32.mrf.mxu1  ;;  %v783_v34 = vsel %vm782_vm8, %v766_v60, 0.0 }
 0x11d   :  { %v767_v58 = vmul.f32 %v1887_v35, %v439_v28  ;;  %784 = vadd.xlane.f32.xlu0 %v783_v34 }
 0x11f   :  { %v786_v57 = vsel %vm782_vm8, %v767_v58, 0.0 }
 0x120   :  { %787 = vadd.xlane.f32.xlu2 %v786_v57  ;;  %v554_v12 = vpop.f32.mrf.mxu2 }
 0x121   :  { %v772_v28 = vmul.f32 %v1887_v35, %v554_v12 }
 0x123   :  { %v801_v55 = vsel %vm782_vm8, %v772_v28, 0.0 }
 0x128   :  { %790 = vadd.xlane.f32.xlu2 %v789_v46 }
 0x129   :  { %v508_v59 = vpop.f32.mrf.mxu0 }
 0x12a   :  { %v770_v11 = vmul.f32 %v1887_v35, %v508_v59 }
 0x12c   :  { %v795_v61 = vsel %vm782_vm8, %v770_v11, 0.0 }
 0x12d   :  { %v531_v31 = vpop.f32.mrf.mxu1  ;;  %796 = vadd.xlane.f32.xlu0 %v795_v61 }
 0x12e   :  { %v771_v47 = vmul.f32 %v1887_v35, %v531_v31 }
 0x130   :  { %v798_v14 = vsel %vm782_vm8, %v771_v47, 0.0  ;;  %v1026_v47 = vld [vmem:[#allocation3] sm:$0x3] }
 0x131   :  { %799 = vadd.xlane.f32.xlu2 %v798_v14 }
 0x133   :  { %v600_v32 = vpop.f32.mrf.mxu0 }
 0x134   :  { %v774_v2 = vmul.f32 %v765_v62, %v600_v32 }
 0x135   :  { %v623_v36 = vpop.f32.mrf.mxu1  ;;  %v646_v63 = vpop.f32.mrf.mxu2 }
 0x136   :  { %v577_v10 = vpop.f32.mrf.mxu3  ;;  %v775_v21 = vmul.f32 %v765_v62, %v623_v36  ;;  %v807_v23 = vsel %vm782_vm8, %v774_v2, 0.0  ;;  %v776_v50 = vmul.f32 %v765_v62, %v646_v63  ;;  %v1027_v2 = vmax.f32 %v1026_v47, 1.0 }
 0x137   :  { %v773_v34 = vmul.f32 %v1887_v35, %v577_v10 }
 0x138   :  { %v810_v40 = vsel %vm782_vm8, %v775_v21, 0.0  ;;  %v813_v7 = vsel %vm782_vm8, %v776_v50, 0.0  ;;  %1133 = vrcp.f32 %v1027_v2 }
 0x139   :  { %811 = vadd.xlane.f32.xlu1 %v810_v40  ;;  %808 = vadd.xlane.f32.xlu2 %v807_v23  ;;  %v804_v58 = vsel %vm782_vm8, %v773_v34, 0.0 }
 0x13b   :  { %v692_v43 = vpop.f32.mrf.mxu0 }
 0x13c   :  { %v778_v56 = vmul.f32 %v765_v62, %v692_v43 }
 0x13d   :  { %v738_v54 = vpop.f32.mrf.mxu2 }
 0x13e   :  { %v669_v0 = vpop.f32.mrf.mxu3  ;;  %v819_v51 = vsel %vm782_vm8, %v778_v56, 0.0  ;;  %v780_v4 = vmul.f32 %v765_v62, %v738_v54 }
 0x13f   :  { %v777_v48 = vmul.f32 %v765_v62, %v669_v0 }
 0x140   :  { %v825_v45 = vsel %vm782_vm8, %v780_v4, 0.0 }
 0x141   :  { %v816_v44 = vsel %vm782_vm8, %v777_v48, 0.0  ;;  %814 = vadd.xlane.f32.xlu1 %v813_v7  ;;  %v715_v5 = vpop.f32.mrf.mxu1  ;;  %820 = vadd.xlane.f32.xlu2 %v819_v51 }
 0x142   :  { %817 = vadd.xlane.f32.xlu0 %v816_v44  ;;  %v779_v26 = vmul.f32 %v765_v62, %v715_v5 }
 0x144   :  { %v822_v33 = vsel %vm782_vm8, %v779_v26, 0.0 }
 0x146   :  { %v761_v29 = vpop.f32.mrf.mxu3 }
 0x147   :  { %v781_v60 = vmul.f32 %v765_v62, %v761_v29  ;;  %v1134_v29 = vpop.eup %1133 }
 0x148   :  { %v1029_v34 = vmul.f32 %v1134_v29, %v1027_v2  ;;  %vm1034_vm5 = vweird.f32 %v1134_v29 }
 0x149   :  { %823 = vadd.xlane.f32.xlu1 %v822_v33  ;;  %v828_v41 = vsel %vm782_vm8, %v781_v60, 0.0  ;;  %vm1033_vm8 = vweird.f32 %v1027_v2 }
 0x14a   :  { %826 = vadd.xlane.f32.xlu0 %v825_v45  ;;  %829 = vadd.xlane.f32.xlu2 %v828_v41  ;;  %vm1035_vm9 = vmor %vm1033_vm8, %vm1034_vm5 }
 0x151   :  { %802 = vadd.xlane.f32.xlu1 %v801_v55 }
 0x152   :  { %805 = vadd.xlane.f32.xlu0 %v804_v58 }
 0x162   :  { %1060 = vperm.xlu2 %1099, %v1058_v9  }
 0x18b   :  { %v794_v17 = vpop.xlane.xlu1 %793 }
 0x190   :  { %v785_v57 = vpop.xlane.xlu0 %784 }
 0x191   :  { %v946_v61 = vmul.f32 %v1865_v16, %v785_v57  ;;  %v1030_v57 = vsub.f32 1.0, %v1029_v34 }
 0x193   :  { %v788_v13 = vpop.xlane.xlu2 %787 }
 0x194   :  { %v947_v31 = vmul.f32 %v1863_v27, %v788_v13  ;;  %v963_v27 = vsel %vm962_vm7, %v946_v61, 0.0  ;;  %v1037_v61 = vand.u32 2147483647, %v1027_v2 }
 0x196   :  { %v964_v21 = vsel %vm962_vm7, %v947_v31, 0.0  ;;  %v1039_v31 = vand.u32 2147483648, %v1027_v2  ;;  %vm1038_vm10 = vcmp.eq.f32.partialorder %v1037_v61, 8.507059e+37 }
 0x19b   :  { %v791_v24 = vpop.xlane.xlu2 %790 }
 0x19c   :  { %v948_v62 = vmul.f32 %v1874_v22, %v791_v24 }
 0x19e   :  { %v966_v23 = vsel %vm962_vm7, %v948_v62, 0.0 }
 0x1a0   :  { %v797_v39 = vpop.xlane.xlu0 %796 }
 0x1a1   :  { %v950_v26 = vmul.f32 %v1898_v18, %v797_v39  ;;  %v945_v39 = vld [vmem:[#allocation2] sm:$0x3] }
 0x1a3   :  { %v970_v28 = vsel %vm962_vm7, %v950_v26, 0.0 }
 0x1a4   :  { %v800_v38 = vpop.xlane.xlu2 %799 }
 0x1a5   :  { %v951_v51 = vmul.f32 %v1906_v19, %v800_v38 }
 0x1ac   :  { %v812_v30 = vpop.xlane.xlu1 %811  ;;  %v809_v59 = vpop.xlane.xlu2 %808 }
 0x1ad   :  { %v955_v35 = vmul.f32 %v1871_v52, %v812_v30  ;;  %v954_v46 = vmul.f32 %v1876_v20, %v809_v59 }
 0x1af   :  { %v978_v11 = vsel %vm962_vm7, %v954_v46, 0.0  ;;  %v979_v12 = vsel %vm962_vm7, %v955_v35, 0.0  ;;  %v1031_v35 = vmul.f32 %v1134_v29, %v1030_v57 }
 0x1b0   :  { %v980_v14 = vadd.f32 %v979_v12, %v978_v11 }
 0x1b4   :  { %v815_v32 = vpop.xlane.xlu1 %814  ;;  %v821_v20 = vpop.xlane.xlu2 %820 }
 0x1b5   :  { %v818_v36 = vpop.xlane.xlu0 %817  ;;  %v956_v10 = vmul.f32 %v1881_v42, %v815_v32  ;;  %v958_v63 = vmul.f32 %v1904_v6, %v821_v20  ;;  %v949_v42 = vmul.f32 %v1889_v49, %v794_v17 }
 0x1b6   :  { %v957_v52 = vmul.f32 %v1895_v8, %v818_v36  ;;  %v965_v8 = vadd.f32 %v964_v21, %v963_v27 }
 0x1b7   :  { %v981_v16 = vsel %vm962_vm7, %v956_v10, 0.0  ;;  %v985_v43 = vsel %vm962_vm7, %v958_v63, 0.0  ;;  %v968_v6 = vsel %vm962_vm7, %v949_v42, 0.0 }
 0x1b8   :  { %v982_v40 = vadd.f32 %v981_v16, %v980_v14  ;;  %v983_v22 = vsel %vm962_vm7, %v957_v52, 0.0  ;;  %v967_v0 = vadd.f32 %v966_v23, %v965_v8 }
 0x1ba   :  { %v984_v50 = vadd.f32 %v983_v22, %v982_v40  ;;  %v969_v33 = vadd.f32 %v968_v6, %v967_v0 }
 0x1bc   :  { %v986_v56 = vadd.f32 %v985_v43, %v984_v50  ;;  %v824_v48 = vpop.xlane.xlu1 %823  ;;  %v971_v18 = vadd.f32 %v970_v28, %v969_v33 }
 0x1bd   :  { %v827_v7 = vpop.xlane.xlu0 %826  ;;  %v959_v54 = vmul.f32 %v1914_v25, %v824_v48  ;;  %v830_v5 = vpop.xlane.xlu2 %829 }
 0x1be   :  { %v960_v44 = vmul.f32 %v1917_v1, %v827_v7  ;;  %v961_v4 = vmul.f32 %v1927_v37, %v830_v5  ;;  %v972_v1 = vsel %vm962_vm7, %v951_v51, 0.0 }
 0x1bf   :  { %v987_v49 = vsel %vm962_vm7, %v959_v54, 0.0  ;;  %v973_v37 = vadd.f32 %v972_v1, %v971_v18 }
 0x1c0   :  { %v988_v60 = vadd.f32 %v987_v49, %v986_v56  ;;  %v989_v45 = vsel %vm962_vm7, %v960_v44, 0.0  ;;  %v991_v25 = vsel %vm962_vm7, %v961_v4, 0.0 }
 0x1c2   :  { %v990_v41 = vadd.f32 %v989_v45, %v988_v60 }
 0x1c4   :  { %v992_v55 = vadd.f32 %v991_v25, %v990_v41  ;;  %v803_v19 = vpop.xlane.xlu1 %802 }
 0x1c5   :  { %v806_v58 = vpop.xlane.xlu0 %805  ;;  %v952_v9 = vmul.f32 %v1921_v15, %v803_v19  ;;  %v1032_v15 = vadd.f32 %v1134_v29, %v1031_v35  ;;  %v1061_v52 = vpop.permute.xlu2 %1060 }
 0x1c6   :  { %v953_v13 = vmul.f32 %v1925_v53, %v806_v58  ;;  %v995_v17 = vrot.slane %v992_v55, 7  ;;  %v1040_v53 = vor.u32 1.1754944e-38, %v1039_v31  ;;  %vm1062_vm4 = vcmp.eq.s32.totalorder %v1858_v3, %v1061_v52 }
 0x1c7   :  { %v974_v24 = vsel %vm962_vm7, %v952_v9, 0.0  ;;  %v1036_v12 = vsel %vm1035_vm9, %v1134_v29, %v1032_v15 }
 0x1c8   :  { %v975_v38 = vadd.f32 %v974_v24, %v973_v37  ;;  %v976_v30 = vsel %vm962_vm7, %v953_v13, 0.0  ;;  %v1041_v32 = vsel %vm1038_vm10, %v1040_v53, %v1036_v12 }
 0x1ca   :  { %v977_v59 = vadd.f32 %v976_v30, %v975_v38 }
 0x1cc   :  { %v997_v46 = vsel %vm996_vm2, %v995_v17, %v977_v59 }
 0x1cd   :  { %v999_v11 = vadd.f32 %v997_v46, %v945_v39 }
 0x1cf   :  { %1000 = vst [vmem:[#allocation2] sm:$0x3] %v999_v11 }
 0x1d6   :  { %v1025_v47 = vld [vmem:[#allocation2] sm:$0x3] }
 0x1d7   :  { %v1042_v14 = vmul.f32 %v1041_v32, %v1025_v47 }
 0x1d9   :  { %v1044_v62 = vsel %vm1043_vm6, %v1042_v14, -1e+30  ;;  %v1069_v36 = vsel %vm1043_vm6, %v1042_v14, 0.0  ;;  %v1063_v20 = vsel %vm1062_vm4, %v1042_v14, 0.0 }
 0x1da   :  { %v1046_v10 = vsel %vm1045_vm12, %v1044_v62, -inf  ;;  %v1064_v21 = vsel %vm1045_vm12, %v1063_v20, 0.0 }
 0x1db   :  { %1047 = vmax.xlane.f32.xlu1 %v1046_v10 }
 0x1e3   :  { %1065 = vadd.xlane.f32.xlu1 %v1064_v21 }
 0x24e   :  { %v1048_v2 = vpop.xlane.xlu1 %1047 }
 0x24f   :  { %v1049_v27 = vsub.f32 %v1044_v62, %v1048_v2 }
 0x251   :  { %v1050_v16 = vmul.f32 1.442695, %v1049_v27 }
 0x253   :  { %1135 = vpow2.f32 %v1050_v16 }
 0x256   :  { %v1066_v8 = vpop.xlane.xlu1 %1065 }
 0x259   :  { %v1136_v63 = vpop.eup %1135 }
 0x25a   :  { %v1052_v40 = vsel %vm1045_vm12, %v1136_v63, 0.0 }
 0x25b   :  { %1053 = vadd.xlane.f32.xlu0 %v1052_v40 }
 0x2ce   :  { %v1054_v23 = vpop.xlane.xlu0 %1053 }
 0x2cf   :  { %1137 = vlog2.f32 %v1054_v23 }
 0x2d5   :  { %v1138_v22 = vpop.eup %1137 }
 0x2d6   :  { %v1056_v43 = vmul.f32 0.6931472, %v1138_v22 }
 0x2d8   :  { %v1057_v42 = vadd.f32 %v1056_v43, %v1048_v2 }
 0x2da   :  { %v1067_v50 = vsub.f32 %v1057_v42, %v1066_v8 }
 0x2dc   :  { %v1070_v0 = vsel %vm1068_vm0, %v1067_v50, %v1069_v36 }
 0x2dd   :  { %1071 = vst [vmem:[%s2005_s5] sm:$0x3] %v1070_v0 }
 0x2de   :  { %1076 = vsyncpa [#allocation5], 1 }

</bundles_post_ra>
